<compile_context>
chip_gen: v5e
topology: v5e:2x2
jax: 0.10.0
libtpu: 0.0.40
codegen_flags: <defaults>
</compile_context>

<pallas_src>
import functools

import jax
import jax.numpy as jnp
from jax.experimental import pallas as pl
from jax.experimental.pallas import tpu as pltpu


# --------------------------------------------------------------------------
# Fused kernel (factory closes over the static tile geometry).
# --------------------------------------------------------------------------
def _make_kernel(Nb, H, dilation):
    d = dilation
    M = Nb * H
    f32, bf16 = jnp.float32, jnp.bfloat16

    def _sepconv(a, q_ref, w_ref):
        """Depthwise 3x3 + pointwise 1x1 (+ folded BN scale) on one slab.

        a      : (Nb, H, C)      f32 activation, lane index = w*C_ch + c
        q_ref  : (Nb, H+2d, C)   f32 VMEM halo scratch (per-image vertical pad)
        w_ref  : (3, C, Cout)    bf16 per-kernel-row block-banded tap matrices
        returns: (Nb*H, Cout)    f32
        """
        C = a.shape[-1]
        Cout = w_ref.shape[-1]

        # Stage `a` into the vertically zero-padded halo buffer.  The three
        # row-shifted copies required by the 3 kernel rows are then plain
        # static slices (no shift matmuls, no roll); image boundaries are
        # handled per-image by the halo rows.
        q_ref[:, 0:d, :] = jnp.zeros((Nb, d, C), f32)
        q_ref[:, H + d:H + 2 * d, :] = jnp.zeros((Nb, d, C), f32)
        q_ref[:, d:H + d, :] = a

        taps = (
            q_ref[:, 0:H, :].reshape(M, C).astype(bf16),               # ky=0: row i-d
            a.reshape(M, C).astype(bf16),                              # ky=1: row i
            q_ref[:, 2 * d:2 * d + H, :].reshape(M, C).astype(bf16),   # ky=2: row i+d
        )
        w = w_ref[...]                                                 # (3, C, Cout) bf16

        if C % 128 == 0:
            # Lane-aligned: collapse the 3 tap matmuls into ONE MXU matmul
            # with K = 3*C (single result drain, K-accumulation inside MXU).
            lhs = jnp.concatenate(taps, axis=-1)                       # (M, 3C)
            return jnp.dot(lhs, w.reshape(3 * C, Cout),
                           preferred_element_type=f32)

        # Narrow case (conv2: C = W*mid = 64 < 128 lanes): keep 3 accumulated
        # matmuls instead of an unaligned lane concat.
        acc = jnp.dot(taps[1], w[1], preferred_element_type=f32)
        acc = acc + jnp.dot(taps[0], w[0], preferred_element_type=f32)
        acc = acc + jnp.dot(taps[2], w[2], preferred_element_type=f32)
        return acc

    def kernel(x_ref, m1_ref, b1_ref, m2_ref, b2_ref, o_ref, xq_ref, hq_ref):
        WCin = x_ref.shape[-1]
        Wm = b1_ref.shape[-1]
        WCout = b2_ref.shape[-1]

        x = x_ref[...].astype(f32)                       # (Nb, H, W*Cin)

        # conv1: SepConvBR (bias add = folded BN bias) + ReLU
        h = jnp.maximum(_sepconv(x, xq_ref, m1_ref) + b1_ref[...], 0.0)

        # conv2: SepConvBR (no ReLU) + identity shortcut, then final ReLU
        y = _sepconv(h.reshape(Nb, H, Wm), hq_ref, m2_ref) + b2_ref[...]
        y = y + x.reshape(M, WCin)                       # identity shortcut (f32)
        o_ref[...] = jnp.maximum(y, 0.0).reshape(Nb, H, WCout).astype(o_ref.dtype)

    return kernel


# --------------------------------------------------------------------------
# One-time weight preprocessing (hoisted out of the per-call path).
# --------------------------------------------------------------------------
def _selector(n, delta, dtype=jnp.float32):
    """(n, n) matrix A with A[i, j] = 1 iff i == j + delta (else 0)."""
    i = jnp.arange(n)[:, None]
    j = jnp.arange(n)[None, :]
    return (i - j == delta).astype(dtype)


def prepare_weights(params, *, width, dilation=1):
    """Fold BN scale into the pointwise weights, fuse the horizontal depthwise
    taps with the pointwise conv into per-kernel-row block-banded (W*Cin,
    W*Cout) matrices (W-boundary zero padding baked in), cast to bf16 for the
    MXU, and tile the BN bias.  Call once per layer; only arrays are returned
    so the result can be passed straight into a jitted forward."""
    W = width

    def prep(c):
        pw_scaled = (c["pw"] * c["scale"][None, :]).astype(jnp.float32)
        dw = c["dw"].astype(jnp.float32)
        Cin, Cout = pw_scaled.shape
        mats = []
        for ky in range(3):
            m = jnp.zeros((W * Cin, W * Cout), jnp.float32)
            for kx in range(3):
                dx = (kx - 1) * dilation
                S = _selector(W, dx)                        # (W, W) band
                blk = dw[ky, kx, :, None] * pw_scaled       # (Cin, Cout)
                m = m + jnp.kron(S, blk)
            mats.append(m)
        m3 = jnp.stack(mats).astype(jnp.bfloat16)           # (3, W*Cin, W*Cout)
        b = jnp.tile(c["bias"].astype(jnp.float32), W).reshape(1, W * Cout)
        return m3, b

    m1, b1 = prep(params["conv1"])
    m2, b2 = prep(params["conv2"])
    return {"m1": m1, "b1": b1, "m2": m2, "b2": b2}


# --------------------------------------------------------------------------
# Public entry points.
# --------------------------------------------------------------------------
def _pick_batch_tile(N, H, target_rows=128):
    """Smallest divisor Nb of N with Nb*H >= min(target_rows, N*H).

    Fills the MXU M dimension (>=128 rows for v5e; use target_rows=256 on
    v6e/v7x when N is large enough) while keeping as many grid steps as
    possible (>=2 parallel steps lets both v7x TensorCores work)."""
    want = min(target_rows, N * H)
    for nb in range(1, N + 1):
        if N % nb == 0 and nb * H >= want:
            return nb
    return N


def narrow_bottleneck_pallas_nhwc(x_nhwc, prepared, *, dilation=1,
                                  target_rows=128):
    """Fused Narrow_BottleNeck forward, NHWC in / NHWC out (preferred path)."""
    N, H, W, Cin = x_nhwc.shape
    m1, b1 = prepared["m1"], prepared["b1"]
    m2, b2 = prepared["m2"], prepared["b2"]
    WCin, Wm = m1.shape[1], m1.shape[2]
    WCout = m2.shape[2]
    if WCin != W * Cin:
        raise ValueError("prepared weights do not match input width/channels")
    if WCout != W * Cin:
        # TODO(synk): projection shortcut (iden_mapping=False) / stride > 1
        # not implemented (never used by the iden_mapping=True configuration).
        raise NotImplementedError("only iden_mapping=True supported")

    d = dilation
    Nb = _pick_batch_tile(N, H, target_rows)
    kernel = _make_kernel(Nb, H, d)

    x2 = x_nhwc.reshape(N, H, W * Cin)       # free view: lane-dense slab

    out2 = pl.pallas_call(
        kernel,
        out_shape=jax.ShapeDtypeStruct((N, H, WCout), x_nhwc.dtype),
        grid=(N // Nb,),
        in_specs=[
            pl.BlockSpec((Nb, H, WCin), lambda n: (n, 0, 0)),
            # Grid-invariant operands: DMA'd once, revisited thereafter.
            # TODO(synk): pipeline_mode=pl.Buffered(1) once W grows enough for
            # the W^2-scaling tap matrices to pressure v7x's 64 MiB VMEM.
            pl.BlockSpec((3, WCin, Wm), lambda n: (0, 0, 0)),
            pl.BlockSpec((1, Wm), lambda n: (0, 0)),
            pl.BlockSpec((3, Wm, WCout), lambda n: (0, 0, 0)),
            pl.BlockSpec((1, WCout), lambda n: (0, 0)),
        ],
        out_specs=pl.BlockSpec((Nb, H, WCout), lambda n: (n, 0, 0)),
        scratch_shapes=[
            pltpu.VMEM((Nb, H + 2 * d, WCin), jnp.float32),   # x vertical halo
            pltpu.VMEM((Nb, H + 2 * d, Wm), jnp.float32),     # h vertical halo
        ],
        compiler_params=pltpu.CompilerParams(
            dimension_semantics=("parallel",),
        ),
    )(x2, m1, b1, m2, b2)
    return out2.reshape(N, H, W, Cin)


def narrow_bottleneck_pallas(x_nchw, prepared, *, dilation=1):
    """PyTorch-layout (NCHW) compatibility wrapper around the NHWC path.
    Prefer the NHWC entry point in production: each transpose below is a
    separate XLA kernel with a full HBM round trip."""
    x = jnp.transpose(x_nchw, (0, 2, 3, 1))
    y = narrow_bottleneck_pallas_nhwc(x, prepared, dilation=dilation)
    return jnp.transpose(y, (0, 3, 1, 2))


# --------------------------------------------------------------------------
# Pure-JAX reference (lax conv, f32) for correctness check.
# --------------------------------------------------------------------------
def _sepconv_ref(x_nhwc, dw_w, pw_w, scale, bias, dilation, relu):
    Cin = x_nhwc.shape[-1]
    dw = dw_w.reshape(3, 3, 1, Cin)   # HWIO, feature_group_count=Cin
    y = jax.lax.conv_general_dilated(
        x_nhwc, dw, window_strides=(1, 1),
        padding=[(dilation, dilation), (dilation, dilation)],
        rhs_dilation=(dilation, dilation),
        dimension_numbers=("NHWC", "HWIO", "NHWC"),
        feature_group_count=Cin)
    y = jnp.einsum("nhwc,cd->nhwd", y, pw_w)
    y = y * scale + bias
    return jnp.maximum(y, 0.0) if relu else y


def narrow_bottleneck_ref(x_nchw, params, *, dilation=1):
    x = jnp.transpose(x_nchw, (0, 2, 3, 1))
    c1, c2 = params["conv1"], params["conv2"]
    h = _sepconv_ref(x, c1["dw"], c1["pw"], c1["scale"], c1["bias"], dilation, True)
    r = _sepconv_ref(h, c2["dw"], c2["pw"], c2["scale"], c2["bias"], dilation, False)
    return jnp.transpose(jnp.maximum(r + x, 0.0), (0, 3, 1, 2))


def _fold_bn(gamma, beta, mean, var, eps=1e-5):
    scale = gamma / jnp.sqrt(var + eps)
    bias = beta - mean * scale
    return scale, bias


def _make_sepconv_params(key, cin, cout):
    k = jax.random.split(key, 6)
    dw = 0.2 * jax.random.normal(k[0], (3, 3, cin), jnp.float32)
    pw = 0.2 * jax.random.normal(k[1], (cin, cout), jnp.float32)
    gamma = 1.0 + 0.1 * jax.random.normal(k[2], (cout,), jnp.float32)
    beta = 0.1 * jax.random.normal(k[3], (cout,), jnp.float32)
    mean = 0.1 * jax.random.normal(k[4], (cout,), jnp.float32)
    var = jnp.abs(jax.random.normal(k[5], (cout,), jnp.float32)) + 0.5
    scale, bias = _fold_bn(gamma, beta, mean, var)
    return {"dw": dw, "pw": pw, "scale": scale, "bias": bias}


if __name__ == "__main__":
    # Narrow_BottleNeck(in_channels=16, mid_channels=4, stride=1, dilation=1,
    #                   iden_mapping=True); expansion = 4 -> out_channels = 16
    N, C_in, H, W = 2, 16, 16, 16
    mid = 4
    expansion = 4
    dilation = 1

    key = jax.random.PRNGKey(0)
    kx_, k1, k2 = jax.random.split(key, 3)
    x = jax.random.normal(kx_, (N, C_in, H, W), jnp.float32)   # NCHW like PyTorch

    params = {
        "conv1": _make_sepconv_params(k1, C_in, mid),
        "conv2": _make_sepconv_params(k2, mid, mid * expansion),
    }

    # One-time per-layer weight preprocessing (review: hoisted out of the
    # per-call path), then jit the forward so only the fused kernel runs.
    prepared = prepare_weights(params, width=W, dilation=dilation)
    fwd = jax.jit(functools.partial(narrow_bottleneck_pallas, dilation=dilation))

    out = jax.block_until_ready(fwd(x, prepared))
    ref = jax.block_until_ready(narrow_bottleneck_ref(x, params, dilation=dilation))

    assert out.shape == (N, mid * expansion, H, W)
    max_err = float(jnp.max(jnp.abs(out - ref)))
    # bf16 MXU operands (f32 accumulation, f32 bias/residual): expect ~1e-2
    # max abs deviation from the pure-f32 reference at these magnitudes.
    assert max_err < 5e-2, f"max abs error {max_err}"

    print("KERNEL_OK")
</pallas_src>

<mosaic_0001>
module attributes {stable_mosaic.version = 11 : i64} {
  func.func @kernel(%arg0: i32, %arg1: memref<2x16x256xf32, #tpu.memory_space<vmem>>, %arg2: memref<3x256x64xbf16, #tpu.memory_space<vmem>>, %arg3: memref<1x64xf32, #tpu.memory_space<vmem>>, %arg4: memref<3x64x256xbf16, #tpu.memory_space<vmem>>, %arg5: memref<1x256xf32, #tpu.memory_space<vmem>>, %arg6: memref<2x16x256xf32, #tpu.memory_space<vmem>>, %arg7: memref<2x18x256xf32, #tpu.memory_space<vmem>>, %arg8: memref<2x18x64xf32, #tpu.memory_space<vmem>>) attributes {dimension_semantics = [#tpu.dimension_semantics<parallel>], iteration_bounds = array<i64: 1>, scalar_prefetch = 0 : i64, scratch_operands = 2 : i64, tpu.core_type = #tpu.core_type<tc>, window_params = [{transform_indices = @transform_0, window_bounds = array<i64: 2, 16, 256>}, {pipeline_mode = #tpu.pipeline_mode<synchronous>, transform_indices = @transform_1, window_bounds = array<i64: 3, 256, 64>}, {pipeline_mode = #tpu.pipeline_mode<synchronous>, transform_indices = @transform_2, window_bounds = array<i64: 1, 64>}, {pipeline_mode = #tpu.pipeline_mode<synchronous>, transform_indices = @transform_3, window_bounds = array<i64: 3, 64, 256>}, {pipeline_mode = #tpu.pipeline_mode<synchronous>, transform_indices = @transform_4, window_bounds = array<i64: 1, 256>}, {transform_indices = @transform_5, window_bounds = array<i64: 2, 16, 256>}]} {
    %c0 = arith.constant 0 : index
    %c0_0 = arith.constant 0 : index
    %c0_1 = arith.constant 0 : index
    %0 = vector.load %arg1[%c0, %c0_0, %c0_1] : memref<2x16x256xf32, #tpu.memory_space<vmem>>, vector<2x16x256xf32>
    %cst = arith.constant 0.000000e+00 : f32
    %1 = vector.broadcast %cst : f32 to vector<2x1x256xf32>
    %c0_2 = arith.constant 0 : index
    %c0_3 = arith.constant 0 : index
    %c0_4 = arith.constant 0 : index
    %2 = vector.load %arg7[%c0_2, %c0_3, %c0_4] : memref<2x18x256xf32, #tpu.memory_space<vmem>>, vector<2x1x256xf32>
    tpu.vector_store %arg7[%c0_2, %c0_3, %c0_4], %1 {strides = array<i32>} : memref<2x18x256xf32, #tpu.memory_space<vmem>>, vector<2x1x256xf32>,
    %cst_5 = arith.constant 0.000000e+00 : f32
    %3 = vector.broadcast %cst_5 : f32 to vector<2x1x256xf32>
    %c0_6 = arith.constant 0 : index
    %c17 = arith.constant 17 : index
    %c0_7 = arith.constant 0 : index
    %4 = vector.load %arg7[%c0_6, %c17, %c0_7] : memref<2x18x256xf32, #tpu.memory_space<vmem>>, vector<2x1x256xf32>
    tpu.vector_store %arg7[%c0_6, %c17, %c0_7], %3 {strides = array<i32>} : memref<2x18x256xf32, #tpu.memory_space<vmem>>, vector<2x1x256xf32>,
    %c0_8 = arith.constant 0 : index
    %c1 = arith.constant 1 : index
    %c0_9 = arith.constant 0 : index
    %5 = vector.load %arg7[%c0_8, %c1, %c0_9] : memref<2x18x256xf32, #tpu.memory_space<vmem>>, vector<2x16x256xf32>
    tpu.vector_store %arg7[%c0_8, %c1, %c0_9], %0 {strides = array<i32>} : memref<2x18x256xf32, #tpu.memory_space<vmem>>, vector<2x16x256xf32>,
    %c0_10 = arith.constant 0 : index
    %c0_11 = arith.constant 0 : index
    %c0_12 = arith.constant 0 : index
    %6 = vector.load %arg7[%c0_10, %c0_11, %c0_12] : memref<2x18x256xf32, #tpu.memory_space<vmem>>, vector<2x16x256xf32>
    %7 = vector.shape_cast %6 : vector<2x16x256xf32> to vector<32x256xf32>
    %8 = arith.truncf %7 : vector<32x256xf32> to vector<32x256xbf16>
    %9 = vector.shape_cast %0 : vector<2x16x256xf32> to vector<32x256xf32>
    %10 = arith.truncf %9 : vector<32x256xf32> to vector<32x256xbf16>
    %c0_13 = arith.constant 0 : index
    %c2 = arith.constant 2 : index
    %c0_14 = arith.constant 0 : index
    %11 = vector.load %arg7[%c0_13, %c2, %c0_14] : memref<2x18x256xf32, #tpu.memory_space<vmem>>, vector<2x16x256xf32>
    %12 = vector.shape_cast %11 : vector<2x16x256xf32> to vector<32x256xf32>
    %13 = arith.truncf %12 : vector<32x256xf32> to vector<32x256xbf16>
    %c0_15 = arith.constant 0 : index
    %c0_16 = arith.constant 0 : index
    %c0_17 = arith.constant 0 : index
    %14 = vector.load %arg2[%c0_15, %c0_16, %c0_17] : memref<3x256x64xbf16, #tpu.memory_space<vmem>>, vector<3x256x64xbf16>
    %15 = tpu.concatenate %8, %10, %13 in 1 : vector<32x256xbf16>, vector<32x256xbf16>, vector<32x256xbf16> -> vector<32x768xbf16>
    %16 = vector.shape_cast %14 : vector<3x256x64xbf16> to vector<768x64xbf16>
    %cst_18 = arith.constant dense<0.000000e+00> : vector<32x64xf32>
    %17 = tpu.matmul %15, %16, %cst_18 {dimension_numbers = #tpu.dot_dimension_numbers<[1], [0], [0], [1], [0, 0, 1, 1], [], []>} : vector<32x768xbf16>, vector<768x64xbf16>, vector<32x64xf32> -> vector<32x64xf32>
    %c0_19 = arith.constant 0 : index
    %c0_20 = arith.constant 0 : index
    %18 = vector.load %arg3[%c0_19, %c0_20] : memref<1x64xf32, #tpu.memory_space<vmem>>, vector<1x64xf32>
    %19 = vector.broadcast %18 : vector<1x64xf32> to vector<32x64xf32>
    %20 = arith.addf %17, %19 : vector<32x64xf32>
    %cst_21 = arith.constant 0.000000e+00 : f32
    %21 = vector.broadcast %cst_21 : f32 to vector<32x64xf32>
    %22 = arith.maximumf %20, %21 : vector<32x64xf32>
    %23 = vector.shape_cast %22 : vector<32x64xf32> to vector<2x16x64xf32>
    %cst_22 = arith.constant 0.000000e+00 : f32
    %24 = vector.broadcast %cst_22 : f32 to vector<2x1x64xf32>
    %c0_23 = arith.constant 0 : index
    %c0_24 = arith.constant 0 : index
    %c0_25 = arith.constant 0 : index
    %25 = vector.load %arg8[%c0_23, %c0_24, %c0_25] : memref<2x18x64xf32, #tpu.memory_space<vmem>>, vector<2x1x64xf32>
    tpu.vector_store %arg8[%c0_23, %c0_24, %c0_25], %24 {strides = array<i32>} : memref<2x18x64xf32, #tpu.memory_space<vmem>>, vector<2x1x64xf32>,
    %cst_26 = arith.constant 0.000000e+00 : f32
    %26 = vector.broadcast %cst_26 : f32 to vector<2x1x64xf32>
    %c0_27 = arith.constant 0 : index
    %c17_28 = arith.constant 17 : index
    %c0_29 = arith.constant 0 : index
    %27 = vector.load %arg8[%c0_27, %c17_28, %c0_29] : memref<2x18x64xf32, #tpu.memory_space<vmem>>, vector<2x1x64xf32>
    tpu.vector_store %arg8[%c0_27, %c17_28, %c0_29], %26 {strides = array<i32>} : memref<2x18x64xf32, #tpu.memory_space<vmem>>, vector<2x1x64xf32>,
    %c0_30 = arith.constant 0 : index
    %c1_31 = arith.constant 1 : index
    %c0_32 = arith.constant 0 : index
    %28 = vector.load %arg8[%c0_30, %c1_31, %c0_32] : memref<2x18x64xf32, #tpu.memory_space<vmem>>, vector<2x16x64xf32>
    tpu.vector_store %arg8[%c0_30, %c1_31, %c0_32], %23 {strides = array<i32>} : memref<2x18x64xf32, #tpu.memory_space<vmem>>, vector<2x16x64xf32>,
    %c0_33 = arith.constant 0 : index
    %c0_34 = arith.constant 0 : index
    %c0_35 = arith.constant 0 : index
    %29 = vector.load %arg8[%c0_33, %c0_34, %c0_35] : memref<2x18x64xf32, #tpu.memory_space<vmem>>, vector<2x16x64xf32>
    %30 = vector.shape_cast %29 : vector<2x16x64xf32> to vector<32x64xf32>
    %31 = arith.truncf %30 : vector<32x64xf32> to vector<32x64xbf16>
    %32 = vector.shape_cast %23 : vector<2x16x64xf32> to vector<32x64xf32>
    %33 = arith.truncf %32 : vector<32x64xf32> to vector<32x64xbf16>
    %c0_36 = arith.constant 0 : index
    %c2_37 = arith.constant 2 : index
    %c0_38 = arith.constant 0 : index
    %34 = vector.load %arg8[%c0_36, %c2_37, %c0_38] : memref<2x18x64xf32, #tpu.memory_space<vmem>>, vector<2x16x64xf32>
    %35 = vector.shape_cast %34 : vector<2x16x64xf32> to vector<32x64xf32>
    %36 = arith.truncf %35 : vector<32x64xf32> to vector<32x64xbf16>
    %c0_39 = arith.constant 0 : index
    %c0_40 = arith.constant 0 : index
    %c0_41 = arith.constant 0 : index
    %37 = vector.load %arg4[%c0_39, %c0_40, %c0_41] : memref<3x64x256xbf16, #tpu.memory_space<vmem>>, vector<3x64x256xbf16>
    %38 = vector.extract_strided_slice %37 {offsets = [1, 0, 0], sizes = [1, 64, 256], strides = [1, 1, 1]} : vector<3x64x256xbf16> to vector<1x64x256xbf16>
    %39 = vector.shape_cast %38 : vector<1x64x256xbf16> to vector<64x256xbf16>
    %cst_42 = arith.constant dense<0.000000e+00> : vector<32x256xf32>
    %40 = tpu.matmul %33, %39, %cst_42 {dimension_numbers = #tpu.dot_dimension_numbers<[1], [0], [0], [1], [0, 0, 1, 1], [], []>} : vector<32x64xbf16>, vector<64x256xbf16>, vector<32x256xf32> -> vector<32x256xf32>
    %41 = vector.extract_strided_slice %37 {offsets = [0, 0, 0], sizes = [1, 64, 256], strides = [1, 1, 1]} : vector<3x64x256xbf16> to vector<1x64x256xbf16>
    %42 = vector.shape_cast %41 : vector<1x64x256xbf16> to vector<64x256xbf16>
    %cst_43 = arith.constant dense<0.000000e+00> : vector<32x256xf32>
    %43 = tpu.matmul %31, %42, %cst_43 {dimension_numbers = #tpu.dot_dimension_numbers<[1], [0], [0], [1], [0, 0, 1, 1], [], []>} : vector<32x64xbf16>, vector<64x256xbf16>, vector<32x256xf32> -> vector<32x256xf32>
    %44 = arith.addf %40, %43 : vector<32x256xf32>
    %45 = vector.extract_strided_slice %37 {offsets = [2, 0, 0], sizes = [1, 64, 256], strides = [1, 1, 1]} : vector<3x64x256xbf16> to vector<1x64x256xbf16>
    %46 = vector.shape_cast %45 : vector<1x64x256xbf16> to vector<64x256xbf16>
    %cst_44 = arith.constant dense<0.000000e+00> : vector<32x256xf32>
    %47 = tpu.matmul %36, %46, %cst_44 {dimension_numbers = #tpu.dot_dimension_numbers<[1], [0], [0], [1], [0, 0, 1, 1], [], []>} : vector<32x64xbf16>, vector<64x256xbf16>, vector<32x256xf32> -> vector<32x256xf32>
    %48 = arith.addf %44, %47 : vector<32x256xf32>
    %c0_45 = arith.constant 0 : index
    %c0_46 = arith.constant 0 : index
    %49 = vector.load %arg5[%c0_45, %c0_46] : memref<1x256xf32, #tpu.memory_space<vmem>>, vector<1x256xf32>
    %50 = vector.broadcast %49 : vector<1x256xf32> to vector<32x256xf32>
    %51 = arith.addf %48, %50 : vector<32x256xf32>
    %52 = vector.shape_cast %0 : vector<2x16x256xf32> to vector<32x256xf32>
    %53 = arith.addf %51, %52 : vector<32x256xf32>
    %cst_47 = arith.constant 0.000000e+00 : f32
    %54 = vector.broadcast %cst_47 : f32 to vector<32x256xf32>
    %55 = arith.maximumf %53, %54 : vector<32x256xf32>
    %56 = vector.shape_cast %55 : vector<32x256xf32> to vector<2x16x256xf32>
    %c0_48 = arith.constant 0 : index
    %c0_49 = arith.constant 0 : index
    %c0_50 = arith.constant 0 : index
    %57 = vector.load %arg6[%c0_48, %c0_49, %c0_50] : memref<2x16x256xf32, #tpu.memory_space<vmem>>, vector<2x16x256xf32>
    tpu.vector_store %arg6[%c0_48, %c0_49, %c0_50], %56 {strides = array<i32>} : memref<2x16x256xf32, #tpu.memory_space<vmem>>, vector<2x16x256xf32>,
    return
  }
  func.func @transform_0(%arg0: i32) -> (i32, i32, i32) {
    %c0_i32 = arith.constant 0 : i32
    %c0_i32_0 = arith.constant 0 : i32
    %c0_i32_1 = arith.constant 0 : i32
    return %arg0, %c0_i32, %c0_i32_0 : i32, i32, i32
  }
  func.func @transform_1(%arg0: i32) -> (i32, i32, i32) {
    %c0_i32 = arith.constant 0 : i32
    %c0_i32_0 = arith.constant 0 : i32
    %c0_i32_1 = arith.constant 0 : i32
    %c0_i32_2 = arith.constant 0 : i32
    return %c0_i32, %c0_i32_0, %c0_i32_1 : i32, i32, i32
  }
  func.func @transform_2(%arg0: i32) -> (i32, i32) {
    %c0_i32 = arith.constant 0 : i32
    %c0_i32_0 = arith.constant 0 : i32
    %c0_i32_1 = arith.constant 0 : i32
    return %c0_i32, %c0_i32_0 : i32, i32
  }
  func.func @transform_3(%arg0: i32) -> (i32, i32, i32) {
    %c0_i32 = arith.constant 0 : i32
    %c0_i32_0 = arith.constant 0 : i32
    %c0_i32_1 = arith.constant 0 : i32
    %c0_i32_2 = arith.constant 0 : i32
    return %c0_i32, %c0_i32_0, %c0_i32_1 : i32, i32, i32
  }
  func.func @transform_4(%arg0: i32) -> (i32, i32) {
    %c0_i32 = arith.constant 0 : i32
    %c0_i32_0 = arith.constant 0 : i32
    %c0_i32_1 = arith.constant 0 : i32
    return %c0_i32, %c0_i32_0 : i32, i32
  }
  func.func @transform_5(%arg0: i32) -> (i32, i32, i32) {
    %c0_i32 = arith.constant 0 : i32
    %c0_i32_0 = arith.constant 0 : i32
    %c0_i32_1 = arith.constant 0 : i32
    return %arg0, %c0_i32, %c0_i32_0 : i32, i32, i32
  }
}

</mosaic_0001>

<bundles_post_ra>
// kernel: narrow_bottleneck_pallas.1
= control target key start
LH: loop header
LB: loop body
LE: loop exit
PB: predicated region body
PF: predicated region fallthrough
CT: control target
= control target key end

     0   :  { %v29_v0 = vlaneseq  ;;  %v1448_v7 = vmov 0.0   ;;  %vm52_vm1 = vcmask 1040384   ;;  %vm125_vm2 = vcmask 1045504   ;;  %s1931_s1 = inlined_call_operand.vmem [shape: bf16[3,256,64], index: 1, kind: input, shape index: {}]   ;;  %s1932_s0 = inlined_call_operand.vmem [shape: f32[2,16,256], index: 0, kind: input, shape index: {}]   ;;  %s1933_s2 = inlined_call_operand.vmem [shape: f32[1,64], index: 2, kind: input, shape index: {}]   ;;  %s1934_s3 = inlined_call_operand.vmem [shape: bf16[3,64,256], index: 3, kind: input, shape index: {}]   ;;  %s1935_s4 = inlined_call_operand.vmem [shape: f32[1,256], index: 4, kind: input, shape index: {}]   ;;  %s1936_s5 = inlined_call_operand.vmem [shape: f32[2,16,256], index: 5, kind: output, shape index: {}]  }
   0x1   :  { %v1381_v1 = vld [vmem:[%s1931_s1 + $0x38] sm:$0xff]  ;;  %v1380_v5 = vld [vmem:[%s1931_s1 + $0x30] sm:$0xff]  ;;  %v1379_v10 = vld [vmem:[%s1931_s1 + $0x28] sm:$0xff]  ;;  %vm724_vm3 = vcmask 516096   ;;  %vm729_vm4 = vcmask 523264  }
   0x2   :  { %v1389_v2 = vld [vmem:[%s1931_s1 + $0x78] sm:$0xff]  ;;  %vm31_vm0 = vcmp.lt.s32.totalorder %v29_v0, 256  ;;  %606 = vmatpush.bf16.msra.mxu0 %v1381_v1  ;;  %v1388_v6 = vld [vmem:[%s1931_s1 + $0x70] sm:$0xff]  ;;  %v1387_v11 = vld [vmem:[%s1931_s1 + $0x68] sm:$0xff]  ;;  %725 = vst.msk [vmem:[#allocation3] sm:$0x1] %vm724_vm3, %v1448_v7 }
   0x3   :  { %v1397_v3 = vld [vmem:[%s1931_s1 + $0xb8] sm:$0xff]  ;;  %625 = vmatpush.bf16.msra.mxu1 %v1389_v2  ;;  %33 = vst.msk [vmem:[#allocation2] ss:$8 sm:$0x3] %vm31_vm0, %v1448_v7  ;;  %v1396_v8 = vld [vmem:[%s1931_s1 + $0xb0] sm:$0xff]  ;;  %v1395_v12 = vld [vmem:[%s1931_s1 + $0xa8] sm:$0xff] }
   0x4   :  { %v1405_v4 = vld [vmem:[%s1931_s1 + $0xf8] sm:$0xff]  ;;  %644 = vmatpush.bf16.msra.mxu2 %v1397_v3  ;;  %v1404_v9 = vld [vmem:[%s1931_s1 + $0xf0] sm:$0xff]  ;;  %36 = vst.msk [vmem:[#allocation2 + $0x30] ss:$8 sm:$0x3] %vm31_vm0, %v1448_v7  ;;  %v1403_v13 = vld [vmem:[%s1931_s1 + $0xe8] sm:$0xff] }
   0x5   :  { %663 = vmatpush.bf16.msra.mxu3 %v1405_v4  ;;  %39 = vst.msk [vmem:[#allocation2 + $0x21] ss:$8 sm:$0x3] %vm31_vm0, %v1448_v7  ;;  %v1378_v14 = vld [vmem:[%s1931_s1 + $0x20] sm:$0xff]  ;;  %v1539_v19 = vld [vmem:[%s1932_s0 + $0x8] sm:$0xff]  ;;  %v1544_v20 = vld [vmem:[%s1932_s0 + $0x10] sm:$0xff] }
   0x6   :  { %42 = vst.msk [vmem:[#allocation2 + $0x51] ss:$8 sm:$0x3] %vm31_vm0, %v1448_v7  ;;  %607 = vmatpush.bf16.msra.mxu0 %v1380_v5  ;;  %v1386_v15 = vld [vmem:[%s1931_s1 + $0x60] sm:$0xff]  ;;  %v1549_v21 = vld [vmem:[%s1932_s0 + $0x18] sm:$0xff]  ;;  %v54_v23 = vrot.slane %v1539_v19, 7 }
   0x7   :  { %626 = vmatpush.bf16.msra.mxu1 %v1388_v6  ;;  %v1394_v16 = vld [vmem:[%s1931_s1 + $0xa0] sm:$0xff]  ;;  %v55_v24 = vrot.slane %v1544_v20, 7  ;;  %v57_v25 = vrot.slane %v1549_v21, 7  ;;  %v1377_v26 = vld [vmem:[%s1931_s1 + $0x18] sm:$0xff]  ;;  %v1581_v33 = vld [vmem:[%s1932_s0 + $0x28] sm:$0xff]  ;;  %v102_v53 = vpack.c.bf16 %v1549_v21, %v1544_v20 }
   0x8   :  { %645 = vmatpush.bf16.msra.mxu2 %v1396_v8  ;;  %v1402_v17 = vld [vmem:[%s1931_s1 + $0xe0] sm:$0xff]  ;;  %v1385_v27 = vld [vmem:[%s1931_s1 + $0x58] sm:$0xff]  ;;  %78 = vst [vmem:[#allocation2 + $0x8] sm:$0xfe] %v54_v23  ;;  %v1586_v34 = vld [vmem:[%s1932_s0 + $0x30] sm:$0xff]  ;;  %v60_v37 = vrot.slane %v1581_v33, 7 }
   0x9   :  { %664 = vmatpush.bf16.msra.mxu3 %v1404_v9  ;;  %v1534_v18 = vld [vmem:[%s1932_s0] sm:$0xff]  ;;  %v1393_v28 = vld [vmem:[%s1931_s1 + $0x98] sm:$0xff]  ;;  %v1576_v32 = vsel %vm52_vm1, %v54_v23, %v57_v25  ;;  %v61_v38 = vrot.slane %v1586_v34, 7  ;;  %81 = vst [vmem:[#allocation2 + $0x20] sm:$0x1] %v55_v24  ;;  %v1376_v40 = vld [vmem:[%s1931_s1 + $0x10] sm:$0xff]  ;;  %v280_v63 = vunpack.c.l.b16 %v102_v53  ;;  %v281_v1 = vunpack.c.h.b16 %v102_v53 }
   0xa   :  { %608 = vmatpush.bf16.msra.mxu0 %v1379_v10  ;;  %v53_v22 = vrot.slane %v1534_v18, 7  ;;  %v1401_v29 = vld [vmem:[%s1931_s1 + $0xd8] sm:$0xff]  ;;  %v1573_v31 = vld [vmem:[%s1932_s0 + $0x20] sm:$0xff]  ;;  %v1384_v41 = vld [vmem:[%s1931_s1 + $0x50] sm:$0xff]  ;;  %82 = vst [vmem:[#allocation2 + $0x28] sm:$0x1] %v57_v25  ;;  %v101_v52 = vpack.c.bf16 %v1539_v19, %v1534_v18 }
   0xb   :  { %627 = vmatpush.bf16.msra.mxu1 %v1387_v11  ;;  %v1591_v35 = vld [vmem:[%s1932_s0 + $0x38] sm:$0xff]  ;;  %v59_v36 = vrot.slane %v1573_v31, 7  ;;  %v1392_v42 = vld [vmem:[%s1931_s1 + $0x90] sm:$0xff]  ;;  %84 = vst [vmem:[#allocation2 + $0x38] sm:$0xfe] %v60_v37  ;;  %v1375_v49 = vld [vmem:[%s1931_s1 + $0x8] sm:$0xff] }
   0xc   :  { %646 = vmatpush.bf16.msra.mxu2 %v1395_v12  ;;  %77 = vst [vmem:[#allocation2] sm:$0xfe] %v53_v22  ;;  %v1568_v30 = vsel %vm52_vm1, %v53_v22, %v55_v24  ;;  %v63_v39 = vrot.slane %v1591_v35, 7  ;;  %v1400_v43 = vld [vmem:[%s1931_s1 + $0xd0] sm:$0xff]  ;;  %v1383_v50 = vld [vmem:[%s1931_s1 + $0x48] sm:$0xff]  ;;  %v1374_v60 = vld [vmem:[%s1931_s1] sm:$0xff]  ;;  %v278_v62 = vunpack.c.l.b16 %v101_v52  ;;  %v279_v0 = vunpack.c.h.b16 %v101_v52 }
   0xd   :  { %665 = vmatpush.bf16.msra.mxu3 %v1403_v13  ;;  %83 = vst [vmem:[#allocation2 + $0x30] sm:$0xfe] %v59_v36  ;;  %v1610_v45 = vsel %vm52_vm1, %v59_v36, %v61_v38  ;;  %v98_v47 = vpack.c.bf16 %v1576_v32, %v1568_v30  ;;  %v1391_v54 = vld [vmem:[%s1931_s1 + $0x88] sm:$0xff]  ;;  %v1382_v61 = vld [vmem:[%s1931_s1 + $0x40] sm:$0xff]  ;;  %v1413_v4 = vld [vmem:[%s1931_s1 + $0x138] sm:$0xff]  ;;  %v104_v22 = vpack.c.bf16 %v1591_v35, %v1586_v34 }
   0xe   :  { %609 = vmatpush.bf16.msra.mxu0 %v1378_v14  ;;  %v1615_v48 = vsel %vm52_vm1, %v60_v37, %v63_v39  ;;  %v1399_v55 = vld [vmem:[%s1931_s1 + $0xc8] sm:$0xff]  ;;  %87 = vst [vmem:[#allocation2 + $0x50] sm:$0x1] %v61_v38  ;;  %v1390_v2 = vld [vmem:[%s1931_s1 + $0x80] sm:$0xff]  ;;  %v1421_v5 = vld [vmem:[%s1931_s1 + $0x178] sm:$0xff]  ;;  %v286_v9 = vpack.c.b16 %v280_v63, %v278_v62  ;;  %v287_v10 = vpack.c.b16 %v281_v1, %v279_v0 }
   0xf   :  { %628 = vmatpush.bf16.msra.mxu1 %v1386_v15  ;;  %v90_v46 = vld [vmem:[#allocation2 + $0x8] sm:$0xff]  ;;  %88 = vst [vmem:[#allocation2 + $0x58] sm:$0x1] %v63_v39  ;;  %v260_v57 = vunpack.c.l.b16 %v98_v47  ;;  %v261_v59 = vunpack.c.h.b16 %v98_v47  ;;  %v1398_v3 = vld [vmem:[%s1931_s1 + $0xc0] sm:$0xff]  ;;  %v1412_v11 = vld [vmem:[%s1931_s1 + $0x130] sm:$0xff]  ;;  %v100_v24 = vpack.c.bf16 %v1615_v48, %v1610_v45  ;;  %v285_v36 = vunpack.c.h.b16 %v104_v22 }
  0x10   :  { %647 = vmatpush.bf16.msra.mxu2 %v1394_v16  ;;  %v1420_v12 = vld [vmem:[%s1931_s1 + $0x170] sm:$0xff]  ;;  %v1411_v15 = vld [vmem:[%s1931_s1 + $0x128] sm:$0xff]  ;;  %v1410_v25 = vld [vmem:[%s1931_s1 + $0x120] sm:$0xff]  ;;  %v130_v47 = vrot.slane %v1576_v32, 2  ;;  %726 = vst.msk [vmem:[#allocation3 + $0x18] sm:$0x1] %vm724_vm3, %v1448_v7 }
  0x11   :  { %666 = vmatpush.bf16.msra.mxu3 %v1402_v17  ;;  %v1419_v16 = vld [vmem:[%s1931_s1 + $0x168] sm:$0xff]  ;;  %v103_v17 = vpack.c.bf16 %v1581_v33, %v1573_v31  ;;  %v264_v38 = vunpack.c.l.b16 %v100_v24  ;;  %v1408_v32 = vld [vmem:[%s1931_s1 + $0x110] sm:$0xff]  ;;  %727 = vst.msk [vmem:[#allocation3 + $0x11] sm:$0x1] %vm724_vm3, %v1448_v7 }
  0x12   :  { %610 = vmatpush.bf16.msra.mxu0 %v1377_v26  ;;  %v94_v14 = vld [vmem:[#allocation2 + $0x38] sm:$0xff]  ;;  %v1418_v26 = vld [vmem:[%s1931_s1 + $0x160] sm:$0xff]  ;;  %v1407_v63 = vld [vmem:[%s1931_s1 + $0x108] sm:$0xff]  ;;  %728 = vst.msk [vmem:[#allocation3 + $0x29] sm:$0x1] %vm724_vm3, %v1448_v7 }
  0x13   :  { %629 = vmatpush.bf16.msra.mxu1 %v1385_v27  ;;  %v89_v44 = vld [vmem:[#allocation2] sm:$0xff]  ;;  %v282_v27 = vunpack.c.l.b16 %v103_v17  ;;  %v1415_v0 = vld [vmem:[%s1931_s1 + $0x148] sm:$0xff]  ;;  %v1278_v7 = vld [vmem:[%s1934_s3 + $0x18] sm:$0xf0] }
  0x14   :  { %648 = vmatpush.bf16.msra.mxu2 %v1393_v28  ;;  %v97_v51 = vpack.c.bf16 %v90_v46, %v89_v44  ;;  %v93_v13 = vld [vmem:[#allocation2 + $0x30] sm:$0xff]  ;;  %v284_v28 = vunpack.c.l.b16 %v104_v22  ;;  %v108_v44 = vld [vmem:[#allocation2 + $0x28] sm:$0x3]  ;;  %v127_v46 = vrot.slane %v1568_v30, 2 }
  0x15   :  { %667 = vmatpush.bf16.msra.mxu3 %v1401_v29  ;;  %v99_v23 = vpack.c.bf16 %v94_v14, %v93_v13  ;;  %v283_v29 = vunpack.c.h.b16 %v103_v17  ;;  %v137_v14 = vrot.slane %v1610_v45, 2 }
  0x16   :  { %611 = vmatpush.bf16.msra.mxu0 %v1376_v40  ;;  %v258_v56 = vunpack.c.l.b16 %v97_v51  ;;  %v259_v58 = vunpack.c.h.b16 %v97_v51  ;;  %v265_v40 = vunpack.c.h.b16 %v100_v24  ;;  %v1417_v51 = vld [vmem:[%s1931_s1 + $0x158] sm:$0xff] }
  0x17   :  { %630 = vmatpush.bf16.msra.mxu1 %v1384_v41  ;;  %v262_v37 = vunpack.c.l.b16 %v99_v23  ;;  %v263_v39 = vunpack.c.h.b16 %v99_v23  ;;  %v105_v41 = vld [vmem:[#allocation2] sm:$0xfc]  ;;  %v112_v13 = vld [vmem:[#allocation2 + $0x58] sm:$0x3] }
  0x18   :  { %649 = vmatpush.bf16.msra.mxu2 %v1392_v42  ;;  %v266_v6 = vpack.c.b16 %v260_v57, %v258_v56  ;;  %v267_v8 = vpack.c.b16 %v261_v59, %v259_v58  ;;  %v106_v42 = vld [vmem:[#allocation2 + $0x8] sm:$0xfc]  ;;  %v134_v57 = vrot.slane %v108_v44, 2  ;;  %v1416_v58 = vld [vmem:[%s1931_s1 + $0x150] sm:$0xff] }
  0x19   :  { %668 = vmatpush.bf16.msra.mxu3 %v1400_v43  ;;  %v107_v43 = vld [vmem:[#allocation2 + $0x20] sm:$0x3]  ;;  %v268_v52 = vpack.c.b16 %v264_v38, %v262_v37  ;;  %v269_v53 = vpack.c.b16 %v265_v40, %v263_v39  ;;  %v129_v56 = vrot.slane %v106_v42, 2  ;;  %v1292_v42 = vld [vmem:[%s1934_s3 + $0x30] sm:$0xf] }
  0x1a   :  { %612 = vmatpush.bf16.msra.mxu0 %v1375_v49  ;;  %v288_v49 = vpack.c.b16 %v284_v28, %v282_v27  ;;  %v132_v30 = vrot.slane %v107_v43, 2  ;;  %v135_v62 = vsel %vm125_vm2, %v130_v47, %v134_v57  ;;  %v1429_v43 = vld [vmem:[%s1934_s3 + $0x34] sm:$0xf0]  ;;  %v1428_v44 = vld [vmem:[%s1934_s3 + $0x34] sm:$0xf] }
  0x1b   :  { %631 = vmatpush.bf16.msra.mxu1 %v1383_v50  ;;  %v1409_v50 = vld [vmem:[%s1931_s1 + $0x118] sm:$0xff]  ;;  %v1320_v57 = vld [vmem:[%s1934_s3 + $0x60] sm:$0xf] }
  0x1c   :  { %650 = vmatpush.bf16.msra.mxu2 %v1391_v54  ;;  %v289_v54 = vpack.c.b16 %v285_v36, %v283_v29 }
  0x1d   :  { %669 = vmatpush.bf16.msra.mxu3 %v1399_v55  ;;  %v126_v55 = vrot.slane %v105_v41, 2 }
  0x1e   :  { %613 = vmatpush.bf16.msra.mxu0 %v1374_v60  ;;  %v131_v60 = vsel %vm125_vm2, %v129_v56, %v130_v47  ;;  %v1294_v47 = vld [vmem:[%s1934_s3 + $0x38] sm:$0xf0] }
  0x1f   :  { %632 = vmatpush.bf16.msra.mxu1 %v1382_v61  ;;  %v128_v59 = vsel %vm125_vm2, %v126_v55, %v127_v46  ;;  %v133_v61 = vsel %vm125_vm2, %v127_v46, %v132_v30  ;;  %v1293_v46 = vor.u32 %v1429_v43, %v1292_v42  ;;  %v1330_v56 = vld [vmem:[%s1934_s3 + $0x78] sm:$0xf0]  ;;  %v1270_v42 = vld [vmem:[%s1934_s3 + $0x8] sm:$0xf0] }
  0x20   :  { %651 = vmatpush.bf16.msra.mxu2 %v1390_v2  ;;  %v154_v1 = vpack.c.bf16 %v131_v60, %v128_v59  ;;  %v155_v2 = vpack.c.bf16 %v135_v62, %v133_v61  ;;  %v1322_v60 = vld [vmem:[%s1934_s3 + $0x68] sm:$0xf0]  ;;  %v1284_v62 = vld [vmem:[%s1934_s3 + $0x20] sm:$0xf] }
  0x21   :  { %670 = vmatpush.bf16.msra.mxu3 %v1398_v3  ;;  %614 = vmatmul.bf16.vlgmr.msra.gmra.mxu0 %v266_v6  ;;  %v1406_v3 = vld [vmem:[%s1931_s1 + $0x100] sm:$0xff] }
  0x22   :  { %682 = vmatpush.bf16.msrb.mxu0 %v1413_v4  ;;  %633 = vmatmul.bf16.vlgmr.msra.gmra.mxu1 %v267_v8  ;;  %v1414_v4 = vld [vmem:[%s1931_s1 + $0x140] sm:$0xff]  ;;  %v300_v6 = vunpack.c.l.b16 %v155_v2  ;;  %v299_v8 = vunpack.c.h.b16 %v154_v1 }
  0x23   :  { %701 = vmatpush.bf16.msrb.mxu1 %v1421_v5  ;;  %652 = vmatmul.bf16.vlgmr.msra.gmra.mxu2 %v286_v9  ;;  %v298_v5 = vunpack.c.l.b16 %v154_v1  ;;  %v301_v9 = vunpack.c.h.b16 %v155_v2 }
  0x24   :  { %671 = vmatmul.bf16.vlgmr.msra.gmra.mxu3 %v287_v10  ;;  %v109_v10 = vld [vmem:[#allocation2 + $0x30] sm:$0xfc]  ;;  %822 = vmatpush.bf16.msrb.mxu2 %v1293_v46 }
  0x25   :  { %v307_v17 = vpack.c.b16 %v301_v9, %v299_v8  ;;  %v136_v22 = vrot.slane %v109_v10, 2  ;;  %v1432_v10 = vld [vmem:[%s1934_s3 + $0x54] sm:$0xf] }
  0x26   :  { %683 = vmatpush.bf16.msrb.mxu0 %v1412_v11  ;;  %v110_v11 = vld [vmem:[#allocation2 + $0x38] sm:$0xfc] }
  0x27   :  { %702 = vmatpush.bf16.msrb.mxu1 %v1420_v12  ;;  %v111_v12 = vld [vmem:[#allocation2 + $0x50] sm:$0x3]  ;;  %v139_v23 = vrot.slane %v110_v11, 2  ;;  %v1314_v11 = vld [vmem:[%s1934_s3 + $0x58] sm:$0xf0] }
  0x28   :  { %v142_v24 = vrot.slane %v111_v12, 2  ;;  %v1317_v12 = vor.u32 %v1432_v10, %v1314_v11 }
  0x2a   :  { %684 = vmatpush.bf16.msrb.mxu0 %v1411_v15  ;;  %v140_v15 = vrot.slane %v1615_v48, 2  ;;  %v143_v28 = vsel %vm125_vm2, %v137_v14, %v142_v24  ;;  %v1425_v24 = vld [vmem:[%s1934_s3 + $0x14] sm:$0xf0] }
  0x2b   :  { %703 = vmatpush.bf16.msrb.mxu1 %v1419_v16  ;;  %v306_v16 = vpack.c.b16 %v300_v6, %v298_v5  ;;  %v1312_v5 = vld [vmem:[%s1934_s3 + $0x50] sm:$0xf]  ;;  %v1433_v6 = vld [vmem:[%s1934_s3 + $0x54] sm:$0xf0] }
  0x2c   :  { %v141_v27 = vsel %vm125_vm2, %v139_v23, %v140_v15  ;;  %v1313_v9 = vor.u32 %v1433_v6, %v1312_v5  ;;  %v1276_v23 = vld [vmem:[%s1934_s3 + $0x10] sm:$0xf] }
  0x2e   :  { %685 = vmatpush.bf16.msrb.mxu0 %v1410_v25  ;;  %v144_v25 = vrot.slane %v112_v13, 2  ;;  %v1304_v13 = vld [vmem:[%s1934_s3 + $0x40] sm:$0xf] }
  0x2f   :  { %704 = vmatpush.bf16.msrb.mxu1 %v1418_v26  ;;  %v138_v26 = vsel %vm125_vm2, %v136_v22, %v137_v14  ;;  %v1431_v14 = vld [vmem:[%s1934_s3 + $0x44] sm:$0xf0] }
  0x30   :  { %v145_v29 = vsel %vm125_vm2, %v140_v15, %v144_v25  ;;  %v156_v36 = vpack.c.bf16 %v141_v27, %v138_v26  ;;  %v1430_v15 = vld [vmem:[%s1934_s3 + $0x44] sm:$0xf]  ;;  %v1424_v25 = vld [vmem:[%s1934_s3 + $0x14] sm:$0xf] }
  0x31   :  { %619 = vmatmul.bf16.gmra.mxu0 %v268_v52  ;;  %v157_v45 = vpack.c.bf16 %v145_v29, %v143_v28  ;;  %v1328_v52 = vld [vmem:[%s1934_s3 + $0x70] sm:$0xf]  ;;  %v1277_v28 = vor.u32 %v1425_v24, %v1276_v23  ;;  %v1808_v29 = vld [vmem:[%s1933_s2] ss:$0 sm:$0xff]  ;;  %v1350_v24 = vld [vmem:[%s1934_s3 + $0x98] sm:$0xf0] }
  0x32   :  { %686 = vmatpush.bf16.msrb.mxu0 %v1409_v50  ;;  %638 = vmatmul.bf16.gmra.mxu1 %v269_v53  ;;  %v302_v37 = vunpack.c.l.b16 %v156_v36  ;;  %v303_v38 = vunpack.c.h.b16 %v156_v36  ;;  %v1437_v53 = vld [vmem:[%s1934_s3 + $0x74] sm:$0xf0] }
  0x33   :  { %705 = vmatpush.bf16.msrb.mxu1 %v1417_v51  ;;  %657 = vmatmul.bf16.gmra.mxu2 %v288_v49  ;;  %v304_v48 = vunpack.c.l.b16 %v157_v45  ;;  %v305_v39 = vunpack.c.h.b16 %v157_v45  ;;  %v1297_v49 = vor.u32 %v1428_v44, %v1294_v47  ;;  %v1329_v55 = vor.u32 %v1437_v53, %v1328_v52 }
  0x34   :  { %676 = vmatmul.bf16.gmra.mxu3 %v289_v54  ;;  %v1436_v54 = vld [vmem:[%s1934_s3 + $0x74] sm:$0xf]  ;;  %v1281_v45 = vor.u32 %v1424_v25, %v1278_v7  ;;  %v1340_v25 = vld [vmem:[%s1934_s3 + $0x80] sm:$0xf] }
  0x35   :  { %v308_v40 = vpack.c.b16 %v304_v48, %v302_v37  ;;  %v309_v41 = vpack.c.b16 %v305_v39, %v303_v38  ;;  %841 = vmatpush.bf16.msrb.mxu3 %v1297_v49  ;;  %v1333_v30 = vor.u32 %v1436_v54, %v1330_v56  ;;  %v1268_v37 = vld [vmem:[%s1934_s3] sm:$0xf]  ;;  %v1423_v48 = vld [vmem:[%s1934_s3 + $0x4] sm:$0xf0]  ;;  %v1422_v38 = vld [vmem:[%s1934_s3 + $0x4] sm:$0xf] }
  0x36   :  { %687 = vmatpush.bf16.msrb.mxu0 %v1408_v32  ;;  %v1435_v32 = vld [vmem:[%s1934_s3 + $0x64] sm:$0xf0]  ;;  %v1273_v43 = vor.u32 %v1422_v38, %v1270_v42  ;;  %v1445_v56 = vld [vmem:[%s1934_s3 + $0xb4] sm:$0xf0] }
  0x37   :  { %706 = vmatpush.bf16.msrb.mxu1 %v1416_v58  ;;  %v1434_v58 = vld [vmem:[%s1934_s3 + $0x64] sm:$0xf]  ;;  %v1321_v59 = vor.u32 %v1435_v32, %v1320_v57 }
  0x38   :  { %v1325_v61 = vor.u32 %v1434_v58, %v1322_v60  ;;  %v1366_v58 = vld [vmem:[%s1934_s3 + $0xb8] sm:$0xf0] }
  0x3a   :  { %688 = vmatpush.bf16.msrb.mxu0 %v1407_v63  ;;  %v1427_v63 = vld [vmem:[%s1934_s3 + $0x24] sm:$0xf0] }
  0x3b   :  { %707 = vmatpush.bf16.msrb.mxu1 %v1415_v0  ;;  %v1426_v0 = vld [vmem:[%s1934_s3 + $0x24] sm:$0xf] }
  0x3e   :  { %689 = vmatpush.bf16.msrb.mxu0 %v1406_v3  ;;  %v1285_v3 = vor.u32 %v1427_v63, %v1284_v62  ;;  %v1356_v62 = vld [vmem:[%s1934_s3 + $0xa0] sm:$0xf]  ;;  %v1443_v63 = vld [vmem:[%s1934_s3 + $0xa4] sm:$0xf0] }
  0x3f   :  { %708 = vmatpush.bf16.msrb.mxu1 %v1414_v4  ;;  %v1286_v4 = vld [vmem:[%s1934_s3 + $0x28] sm:$0xf0] }
  0x40   :  { %v1289_v8 = vor.u32 %v1426_v0, %v1286_v4  ;;  %823 = vmatpush.bf16.msrb.mxu2 %v1285_v3  ;;  %v1442_v0 = vld [vmem:[%s1934_s3 + $0xa4] sm:$0xf] }
  0x41   :  { %690 = vmatmul.bf16.vlgmr.msrb.gmra.mxu0 %v306_v16  ;;  %v1305_v16 = vor.u32 %v1431_v14, %v1304_v13 }
  0x42   :  { %709 = vmatmul.bf16.vlgmr.msrb.gmra.mxu1 %v307_v17  ;;  %906 = vmatpush.bf16.msra.mxu0 %v1329_v55  ;;  %v1306_v17 = vld [vmem:[%s1934_s3 + $0x48] sm:$0xf0]  ;;  %v1364_v55 = vld [vmem:[%s1934_s3 + $0xb0] sm:$0xf] }
  0x43   :  { %925 = vmatpush.bf16.msra.mxu1 %v1333_v30  ;;  %842 = vmatpush.bf16.msrb.mxu3 %v1289_v8  ;;  %v1309_v22 = vor.u32 %v1430_v15, %v1306_v17  ;;  %v1444_v30 = vld [vmem:[%s1934_s3 + $0xb4] sm:$0xf]  ;;  %v1365_v32 = vor.u32 %v1445_v56, %v1364_v55  ;;  %v1348_v15 = vld [vmem:[%s1934_s3 + $0x90] sm:$0xf] }
  0x44   :  { %824 = vmatpush.bf16.msrb.mxu2 %v1277_v28  ;;  %v1440_v17 = vld [vmem:[%s1934_s3 + $0x94] sm:$0xf] }
  0x45   :  { %v1353_v7 = vor.u32 %v1440_v17, %v1350_v24 }
  0x46   :  { %907 = vmatpush.bf16.msra.mxu0 %v1321_v59 }
  0x47   :  { %926 = vmatpush.bf16.msra.mxu1 %v1325_v61  ;;  %843 = vmatpush.bf16.msrb.mxu3 %v1281_v45  ;;  %v1369_v61 = vor.u32 %v1444_v30, %v1366_v58  ;;  %v1342_v45 = vld [vmem:[%s1934_s3 + $0x88] sm:$0xf0] }
  0x4a   :  { %908 = vmatpush.bf16.msra.mxu0 %v1313_v9 }
  0x4b   :  { %927 = vmatpush.bf16.msra.mxu1 %v1317_v12  ;;  %844 = vmatpush.bf16.msrb.mxu3 %v1273_v43 }
  0x4e   :  { %909 = vmatpush.bf16.msra.mxu0 %v1305_v16  ;;  %v1441_v16 = vld [vmem:[%s1934_s3 + $0x94] sm:$0xf0] }
  0x4f   :  { %928 = vmatpush.bf16.msra.mxu1 %v1309_v22  ;;  %1009 = vmatpush.bf16.msra.mxu3 %v1369_v61  ;;  %v1349_v23 = vor.u32 %v1441_v16, %v1348_v15  ;;  %v1032_v16 = vld [vmem:[%s1935_s4] sm:$0x3] }
  0x50   :  { %v1035_v24 = vperm.slane %v1032_v16, 1 }
  0x51   :  { %695 = vmatmul.bf16.gmra.mxu0 %v308_v40 }
  0x52   :  { %714 = vmatmul.bf16.gmra.mxu1 %v309_v41  ;;  %v1269_v41 = vor.u32 %v1423_v48, %v1268_v37 }
  0x54   :  { %825 = vmatpush.bf16.msrb.mxu2 %v1269_v41 }
  0x58   :  { %990 = vmatpush.bf16.msra.mxu2 %v1365_v32 }
  0x9e   :  { %v1723_v50 = vpop.f32.mrf.mxu0 }
  0x9f   :  { %v1725_v51 = vpop.f32.mrf.mxu1  ;;  %v616_v39 = vadd.f32 %v1808_v29, %v1723_v50 }
  0xa1   :  { %v635_v47 = vadd.f32 %v1725_v51, %v616_v39 }
  0xa6   :  { %v617_v1 = vpop.f32.mrf.mxu0  ;;  %v653_v36 = vpop.f32.mrf.mxu2 }
  0xa7   :  { %v1760_v2 = vpop.f32.mrf.mxu1  ;;  %v672_v40 = vpop.f32.mrf.mxu3  ;;  %v654_v49 = vadd.f32 %v653_v36, %v635_v47  ;;  %v618_v53 = vadd.f32 %v1808_v29, %v617_v1  ;;  %v1357_v1 = vor.u32 %v1443_v63, %v1356_v62  ;;  %v1438_v36 = vld [vmem:[%s1934_s3 + $0x84] sm:$0xf] }
  0xa8   :  { %v1345_v39 = vor.u32 %v1438_v36, %v1342_v45 }
  0xa9   :  { %v673_v54 = vadd.f32 %v672_v40, %v654_v49  ;;  %v637_v59 = vadd.f32 %v1760_v2, %v618_v53  ;;  %v1358_v2 = vld [vmem:[%s1934_s3 + $0xa8] sm:$0xf0]  ;;  %991 = vmatpush.bf16.msra.mxu2 %v1357_v1 }
  0xaa   :  { %v1361_v5 = vor.u32 %v1442_v0, %v1358_v2 }
  0xac   :  { %1010 = vmatpush.bf16.msra.mxu3 %v1361_v5 }
  0xad   :  { %992 = vmatpush.bf16.msra.mxu2 %v1349_v23  ;;  %v1034_v23 = vperm.slane %v1032_v16, 0 }
  0xae   :  { %v620_v26 = vpop.f32.mrf.mxu0  ;;  %v655_v52 = vpop.f32.mrf.mxu2 }
  0xaf   :  { %v639_v27 = vpop.f32.mrf.mxu1  ;;  %v674_v50 = vpop.f32.mrf.mxu3  ;;  %v656_v3 = vadd.f32 %v655_v52, %v637_v59  ;;  %v621_v6 = vadd.f32 %v1808_v29, %v620_v26  ;;  %v1439_v26 = vld [vmem:[%s1934_s3 + $0x84] sm:$0xf0] }
  0xb0   :  { %v1341_v37 = vor.u32 %v1439_v26, %v1340_v25  ;;  %1011 = vmatpush.bf16.msra.mxu3 %v1353_v7 }
  0xb1   :  { %v675_v10 = vadd.f32 %v674_v50, %v656_v3  ;;  %v640_v13 = vadd.f32 %v639_v27, %v621_v6 }
  0xb2   :  { %993 = vmatpush.bf16.msra.mxu2 %v1341_v37 }
  0xb4   :  { %1012 = vmatpush.bf16.msra.mxu3 %v1345_v39 }
  0xb6   :  { %v622_v44 = vpop.f32.mrf.mxu0  ;;  %v658_v8 = vpop.f32.mrf.mxu2 }
  0xb7   :  { %v1824_v46 = vpop.f32.mrf.mxu1  ;;  %v677_v22 = vpop.f32.mrf.mxu3  ;;  %v659_v27 = vadd.f32 %v658_v8, %v640_v13  ;;  %v623_v48 = vadd.f32 %v1808_v29, %v622_v44 }
  0xb9   :  { %v678_v40 = vadd.f32 %v677_v22, %v659_v27  ;;  %v642_v49 = vadd.f32 %v1824_v46, %v623_v48 }
  0xbe   :  { %v691_v57 = vpop.f32.mrf.mxu0  ;;  %v660_v41 = vpop.f32.mrf.mxu2 }
  0xbf   :  { %v710_v51 = vpop.f32.mrf.mxu1  ;;  %v692_v60 = vadd.f32 %v691_v57, %v673_v54  ;;  %v661_v29 = vadd.f32 %v660_v41, %v642_v49  ;;  %v679_v53 = vpop.f32.mrf.mxu3 }
  0xc1   :  { %v711_v4 = vadd.f32 %v710_v51, %v692_v60  ;;  %v680_v56 = vadd.f32 %v679_v53, %v661_v29 }
  0xc3   :  { %v720_v9 = vmax.f32 %v711_v4, 0.0 }
  0xc5   :  { %730 = vst.msk [vmem:[#allocation3 + $0x1] sm:$0xff] %vm729_vm4, %v720_v9 }
  0xc6   :  { %v693_v11 = vpop.f32.mrf.mxu0 }
  0xc7   :  { %v712_v12 = vpop.f32.mrf.mxu1  ;;  %v694_v14 = vadd.f32 %v693_v11, %v675_v10 }
  0xc9   :  { %v713_v28 = vadd.f32 %v712_v12, %v694_v14 }
  0xcb   :  { %v721_v38 = vmax.f32 %v713_v28, 0.0 }
  0xcc   :  { %v734_v50 = vld [vmem:[#allocation3] sm:$0xff] }
  0xcd   :  { %731 = vst.msk [vmem:[#allocation3 + $0x9] sm:$0xff] %vm729_vm4, %v721_v38  ;;  %v740_v42 = vpack.c.bf16 %v721_v38, %v720_v9 }
  0xce   :  { %v696_v43 = vpop.f32.mrf.mxu0 }
  0xcf   :  { %v715_v47 = vpop.f32.mrf.mxu1  ;;  %v697_v52 = vadd.f32 %v696_v43, %v678_v40  ;;  %1334 = vmatmul.msk.bf16.vlgmr.msra.gmra.mxu0 %vm729_vm4, %v740_v42  ;;  %1336 = vmatmul.msk.bf16.vlgmr.msra.gmra.mxu1 %vm729_vm4, %v740_v42 }
  0xd1   :  { %v716_v44 = vadd.f32 %v715_v47, %v697_v52 }
  0xd3   :  { %v722_v54 = vmax.f32 %v716_v44, 0.0 }
  0xd4   :  { %v735_v55 = vld [vmem:[#allocation3 + $0x8] sm:$0xff] }
  0xd5   :  { %732 = vst.msk [vmem:[#allocation3 + $0x19] sm:$0xff] %vm729_vm4, %v722_v54  ;;  %v738_v30 = vpack.c.bf16 %v735_v55, %v734_v50  ;;  %v742_v63 = vld [vmem:[#allocation3 + $0x2] sm:$0xff]  ;;  %v743_v0 = vld [vmem:[#allocation3 + $0xa] sm:$0xff] }
  0xd6   :  { %v698_v57 = vpop.f32.mrf.mxu0  ;;  %v746_v1 = vpack.c.bf16 %v743_v0, %v742_v63 }
  0xd7   :  { %v699_v51 = vadd.f32 %v698_v57, %v680_v56  ;;  %1298 = vmatmul.msk.bf16.vlgmr.msrb.gmra.mxu2 %vm729_vm4, %v738_v30  ;;  %1300 = vmatmul.msk.bf16.vlgmr.msrb.gmra.mxu3 %vm729_vm4, %v738_v30  ;;  %v717_v46 = vpop.f32.mrf.mxu1 }
  0xd9   :  { %v718_v32 = vadd.f32 %v717_v46, %v699_v51 }
  0xdb   :  { %v723_v58 = vmax.f32 %v718_v32, 0.0 }
  0xdc   :  { %v736_v60 = vld [vmem:[#allocation3 + $0x18] sm:$0xff] }
  0xdd   :  { %733 = vst.msk [vmem:[#allocation3 + $0x21] sm:$0xff] %vm729_vm4, %v723_v58  ;;  %v741_v59 = vpack.c.bf16 %v723_v58, %v722_v54 }
  0xdf   :  { %1335 = vmatmul.msk.bf16.gmra.mxu0 %vm729_vm4, %v741_v59  ;;  %1337 = vmatmul.msk.bf16.gmra.mxu1 %vm729_vm4, %v741_v59 }
  0xe4   :  { %v737_v61 = vld [vmem:[#allocation3 + $0x20] sm:$0xff] }
  0xe5   :  { %v739_v62 = vpack.c.bf16 %v737_v61, %v736_v60  ;;  %v744_v2 = vld [vmem:[#allocation3 + $0x1a] sm:$0xff]  ;;  %v745_v3 = vld [vmem:[#allocation3 + $0x22] sm:$0xff] }
  0xe6   :  { %v747_v4 = vpack.c.bf16 %v745_v3, %v744_v2 }
  0xe7   :  { %1299 = vmatmul.msk.bf16.gmra.mxu2 %vm729_vm4, %v739_v62  ;;  %1301 = vmatmul.msk.bf16.gmra.mxu3 %vm729_vm4, %v739_v62 }
  0xf7   :  { %1370 = vmatmul.msk.bf16.vlgmr.msra.gmra.mxu2 %vm729_vm4, %v746_v1  ;;  %1372 = vmatmul.msk.bf16.vlgmr.msra.gmra.mxu3 %vm729_vm4, %v746_v1 }
 0x107   :  { %1371 = vmatmul.msk.bf16.gmra.mxu2 %vm729_vm4, %v747_v4  ;;  %1373 = vmatmul.msk.bf16.gmra.mxu3 %vm729_vm4, %v747_v4 }
 0x14c   :  { %v911_v12 = vpop.f32.mrf.mxu0  ;;  %v930_v13 = vpop.f32.mrf.mxu1 }
 0x154   :  { %v913_v7 = vpop.f32.mrf.mxu0  ;;  %v932_v36 = vpop.f32.mrf.mxu1 }
 0x15a   :  { %v827_v5 = vpop.f32.mrf.mxu2  ;;  %v846_v6 = vpop.f32.mrf.mxu3 }
 0x15b   :  { %v912_v17 = vadd.f32 %v911_v12, %v827_v5  ;;  %v931_v22 = vadd.f32 %v930_v13, %v846_v6 }
 0x15c   :  { %v916_v44 = vpop.f32.mrf.mxu0 }
 0x162   :  { %v829_v8 = vpop.f32.mrf.mxu2  ;;  %v848_v9 = vpop.f32.mrf.mxu3 }
 0x163   :  { %v914_v39 = vadd.f32 %v913_v7, %v829_v8  ;;  %v933_v40 = vadd.f32 %v932_v36, %v848_v9 }
 0x164   :  { %v918_v60 = vpop.f32.mrf.mxu0 }
 0x16a   :  { %v832_v10 = vpop.f32.mrf.mxu2  ;;  %v851_v11 = vpop.f32.mrf.mxu3 }
 0x16b   :  { %v917_v50 = vadd.f32 %v916_v44, %v832_v10 }
 0x172   :  { %v834_v14 = vpop.f32.mrf.mxu2  ;;  %v853_v15 = vpop.f32.mrf.mxu3 }
 0x173   :  { %v919_v62 = vadd.f32 %v918_v60, %v834_v14 }
 0x17a   :  { %v995_v25 = vpop.f32.mrf.mxu2  ;;  %v1014_v26 = vpop.f32.mrf.mxu3 }
 0x17b   :  { %v1024_v27 = vadd.f32 %v995_v25, %v912_v17  ;;  %v1025_v28 = vadd.f32 %v1014_v26, %v931_v22 }
 0x17d   :  { %v1038_v45 = vadd.f32 %v1034_v23, %v1024_v27  ;;  %v1039_v37 = vadd.f32 %v1035_v24, %v1025_v28 }
 0x17f   :  { %v1046_v48 = vadd.f32 %v1038_v45, %v1534_v18  ;;  %v1047_v38 = vadd.f32 %v1039_v37, %v1539_v19  ;;  %v935_v19 = vpop.f32.mrf.mxu1 }
 0x180   :  { %v936_v55 = vadd.f32 %v935_v19, %v851_v11 }
 0x181   :  { %v1054_v41 = vmax.f32 %v1046_v48, 0.0  ;;  %v1055_v42 = vmax.f32 %v1047_v38, 0.0 }
 0x182   :  { %v997_v43 = vpop.f32.mrf.mxu2  ;;  %v1016_v47 = vpop.f32.mrf.mxu3 }
 0x183   :  { %1062 = vst [vmem:[%s1936_s5] sm:$0xff] %v1054_v41  ;;  %v1026_v49 = vadd.f32 %v997_v43, %v914_v39  ;;  %v1027_v52 = vadd.f32 %v1016_v47, %v933_v40 }
 0x184   :  { %1063 = vst [vmem:[%s1936_s5 + $0x8] sm:$0xff] %v1055_v42 }
 0x185   :  { %v1040_v29 = vadd.f32 %v1034_v23, %v1026_v49  ;;  %v1041_v18 = vadd.f32 %v1035_v24, %v1027_v52 }
 0x187   :  { %v1048_v53 = vadd.f32 %v1040_v29, %v1544_v20  ;;  %v1049_v54 = vadd.f32 %v1041_v18, %v1549_v21  ;;  %v937_v61 = vpop.f32.mrf.mxu1 }
 0x188   :  { %v938_v63 = vadd.f32 %v937_v61, %v853_v15 }
 0x189   :  { %v1056_v56 = vmax.f32 %v1048_v53, 0.0  ;;  %v1057_v30 = vmax.f32 %v1049_v54, 0.0 }
 0x18a   :  { %v1000_v57 = vpop.f32.mrf.mxu2  ;;  %v1019_v51 = vpop.f32.mrf.mxu3 }
 0x18b   :  { %1064 = vst [vmem:[%s1936_s5 + $0x10] sm:$0xff] %v1056_v56  ;;  %v1028_v46 = vadd.f32 %v1000_v57, %v917_v50  ;;  %v1029_v32 = vadd.f32 %v1019_v51, %v936_v55 }
 0x18c   :  { %1065 = vst [vmem:[%s1936_s5 + $0x18] sm:$0xff] %v1057_v30 }
 0x18d   :  { %v1042_v58 = vadd.f32 %v1034_v23, %v1028_v46  ;;  %v1043_v20 = vadd.f32 %v1035_v24, %v1029_v32 }
 0x18f   :  { %v1050_v21 = vadd.f32 %v1042_v58, %v1573_v31  ;;  %v1051_v59 = vadd.f32 %v1043_v20, %v1581_v33 }
 0x191   :  { %v1058_v0 = vmax.f32 %v1050_v21, 0.0  ;;  %v1059_v1 = vmax.f32 %v1051_v59, 0.0 }
 0x192   :  { %v1002_v2 = vpop.f32.mrf.mxu2  ;;  %v1021_v3 = vpop.f32.mrf.mxu3 }
 0x193   :  { %1066 = vst [vmem:[%s1936_s5 + $0x20] sm:$0xff] %v1058_v0  ;;  %v1030_v4 = vadd.f32 %v1002_v2, %v919_v62  ;;  %v1031_v5 = vadd.f32 %v1021_v3, %v938_v63 }
 0x194   :  { %1067 = vst [vmem:[%s1936_s5 + $0x28] sm:$0xff] %v1059_v1 }
 0x195   :  { %v1044_v31 = vadd.f32 %v1034_v23, %v1030_v4  ;;  %v1045_v33 = vadd.f32 %v1035_v24, %v1031_v5 }
 0x197   :  { %v1052_v6 = vadd.f32 %v1044_v31, %v1586_v34  ;;  %v1053_v8 = vadd.f32 %v1045_v33, %v1591_v35 }
 0x199   :  { %v1060_v9 = vmax.f32 %v1052_v6, 0.0  ;;  %v1061_v10 = vmax.f32 %v1053_v8, 0.0 }
 0x19b   :  { %1068 = vst [vmem:[%s1936_s5 + $0x30] sm:$0xff] %v1060_v9 }
 0x19c   :  { %1069 = vst [vmem:[%s1936_s5 + $0x38] sm:$0xff] %v1061_v10 }

</bundles_post_ra>
